<compile_context>
chip_gen: v7x
topology: tpu7x:2x2x1
jax: 0.10.0
libtpu: 0.0.40
codegen_flags: <defaults>
</compile_context>

<pallas_src>
import math
import numpy as np
import jax
import jax.numpy as jnp
from jax import lax
from jax.experimental import pallas as pl
from jax.experimental.pallas import tpu as pltpu


LANES = 128           # lane width of a vreg
MAX_TILE_ROWS = 1024  # 1024 x 128 x 4 B = 512 KiB per f32 state tile


def _cdiv(a, b):
    return -(-a // b)


def _round_up(a, b):
    return _cdiv(a, b) * b


def _choose_layout(n):
    """Lane-dense padded layout for n neurons: (rows, 128), rows % 32 == 0.

    rows >= 64  -> at least 2 neuron tiles (v7x megacore), tile_rows <= 1024.
    """
    rows = _round_up(_cdiv(n, LANES), 32)          # int8 spike tile is (32,128)
    if rows < 64:
        n_tiles = 1
    else:
        n_tiles = max(2, _cdiv(rows, MAX_TILE_ROWS))
    tile_rows = _round_up(_cdiv(rows, n_tiles), 32)
    rows = n_tiles * tile_rows
    return rows, tile_rows


def _pick_time_block(T, tile_rows, itemsize):
    """Largest divisor of T with per-grid-step x block <= ~2 MiB, TB <= 32."""
    step_bytes = tile_rows * LANES * itemsize
    cap = max(1, min(32, (2 * 1024 * 1024) // step_bytes))
    tb = 1
    for cand in range(2, min(T, cap) + 1):
        if T % cand == 0:
            tb = cand
    return tb


def make_lif_sim(shape, *, dt, tau, u_rest, r, threshold, tau_s, trace_scale,
                 do_exp_decay=False, additive_spike_trace=True):
    """Build a jitted simulator:
        (x[T, *shape], v[rows,128], tr[rows,128])
          -> (spikes[T, *shape] bool, v_new[rows,128], tr_new[rows,128])
    """
    shape = tuple(shape)
    n = int(np.prod(shape))
    rows, tile_rows = _choose_layout(n)
    n_pad = rows * LANES
    num_tiles = rows // tile_rows

    # loop-invariant scalars, folded host-side (closure constants, no SMEM)
    k = dt / tau
    a_f = float(1.0 - k)
    b_f = float(k * r)
    c_f = float(k * u_rest)
    thr_f = float(threshold)
    u_rest_f = float(u_rest)
    scale_f = float(trace_scale)
    decay_f = float(1.0 - dt / tau_s) if do_exp_decay else float(math.exp(-dt / tau_s))

    def sim(x, v, tr):
        T = x.shape[0]
        tb = _pick_time_block(T, tile_rows, x.dtype.itemsize)

        xf = x.reshape(T, n)
        if n_pad != n:
            xf = jnp.pad(xf, ((0, 0), (0, n_pad - n)))   # only when not aligned
        x3 = xf.reshape(T, rows, LANES)

        x_spec = pl.BlockSpec((tb, tile_rows, LANES), lambda i, t: (t, i, 0))
        s_spec = pl.BlockSpec((tb, tile_rows, LANES), lambda i, t: (t, i, 0))
        st_spec = pl.BlockSpec((tile_rows, LANES), lambda i, t: (i, 0))

        def kernel(x_ref, v_in_ref, tr_in_ref, s_ref, v_ref, tr_ref):
            # time-block 0: load persistent state into the resident out blocks
            @pl.when(pl.program_id(1) == 0)
            def _():
                v_ref[...] = v_in_ref[...]
                tr_ref[...] = tr_in_ref[...]

            def step(t, carry):
                v, trc = carry
                xt = x_ref[t].astype(jnp.float32)          # cast in-kernel
                v_new = a_f * v + b_f * xt + c_f           # compute_potential
                spike = v_new >= thr_f                     # compute_spike
                s_ref[t] = spike.astype(jnp.int8)          # int8 writeback
                v = jnp.where(spike, u_rest_f, v_new)      # refractory_and_reset
                tr_dec = trc * decay_f                     # compute_decay
                if additive_spike_trace:
                    trc = jnp.where(spike, tr_dec + scale_f, tr_dec)
                else:
                    trc = jnp.where(spike, 1.0, tr_dec)
                return v, trc

            v_fin, tr_fin = lax.fori_loop(0, tb, step,
                                          (v_ref[...], tr_ref[...]),
                                          unroll=True)
            v_ref[...] = v_fin
            tr_ref[...] = tr_fin

        s_i8, v_new, tr_new = pl.pallas_call(
            kernel,
            grid=(num_tiles, T // tb),
            in_specs=[x_spec, st_spec, st_spec],
            out_specs=(s_spec, st_spec, st_spec),
            out_shape=(
                jax.ShapeDtypeStruct((T, rows, LANES), jnp.int8),   # spikes
                jax.ShapeDtypeStruct((rows, LANES), jnp.float32),   # potentials
                jax.ShapeDtypeStruct((rows, LANES), jnp.float32),   # traces
            ),
            input_output_aliases={1: 1, 2: 2},   # v_in -> v_out, tr_in -> tr_out
            compiler_params=pltpu.CompilerParams(
                dimension_semantics=("parallel", "arbitrary")),
        )(x3, v, tr)

        if n_pad == n:                       # reshape only (no slice pass)
            s = s_i8.reshape((T,) + shape).astype(jnp.bool_)
        else:
            s = s_i8.reshape(T, n_pad)[:, :n].reshape((T,) + shape).astype(jnp.bool_)
        return s, v_new, tr_new

    return jax.jit(sim, donate_argnums=(1, 2))


def _make_gaussian(k, sigma):
    ax = np.arange(k) - k // 2
    xx, yy = np.meshgrid(ax, ax)
    return np.exp(-(xx ** 2 + yy ** 2) / (2.0 * sigma ** 2)).astype(np.float32)


class LIFPopulationJAX:
    """JAX/Pallas port of LIFPopulation (kwta=None path)."""

    def __init__(self, shape, spike_trace=True, additive_spike_trace=True,
                 tau_s=15.0, trace_scale=1.0, is_inhibitory=False, learning=True,
                 kwta=None, threshold=-55.0, u_rest=-60.0, dt=1.0, r=1.0,
                 tau=15.0, do_exp_decay=False,
                 lat_inh_int=0.5, lat_k_size=3, lat_sigma=3.0):
        if len(shape) == 2:
            shape = (1, *shape)
        if u_rest >= threshold:
            raise ValueError("u_rest should be lower than threshold")
        if lat_k_size % 2 == 0:
            raise ValueError("lat_k_size should be an odd integer.")
        self.shape = tuple(shape)
        self.n = int(np.prod(self.shape))
        self.u_rest = float(u_rest)
        self.kwta = kwta
        self.learning = learning
        self.is_inhibitory = is_inhibitory

        self._rows, self._tile_rows = _choose_layout(self.n)
        self._n_pad = self._rows * LANES

        # persistent state in the padded lane-dense (rows, 128) layout
        self._v = jnp.full((self._rows, LANES), self.u_rest, jnp.float32)
        self._tr = jnp.zeros((self._rows, LANES), jnp.float32)
        self._s = jnp.zeros(self.shape, jnp.bool_)

        # lateral-inhibition buffers (only used by the kwta path)
        mask = -_make_gaussian(lat_k_size, lat_sigma) * lat_inh_int
        self.inhibit_mask = jnp.asarray(mask)
        self.inh_kernel = jnp.stack((self.inhibit_mask,) * self.shape[0])
        self.selected_maps = []

        self._sim = make_lif_sim(self.shape, dt=dt, tau=tau, u_rest=u_rest,
                                 r=r, threshold=threshold, tau_s=tau_s,
                                 trace_scale=trace_scale,
                                 do_exp_decay=do_exp_decay,
                                 additive_spike_trace=additive_spike_trace)

        # TODO(synk): kwta winner-take-all path not implemented (host-sequential
        # argmax + conv2d lateral inhibition); only kwta=None is supported.

    def forward(self, traces_in):
        """traces_in: (*shape) for one step or (T, *shape) for T fused steps."""
        x = jnp.asarray(traces_in)                 # keep native dtype
        single = (x.ndim == len(self.shape))
        if single:
            x = x[None]
        s, self._v, self._tr = self._sim(x, self._v, self._tr)
        self._s = s[-1]
        return s[0] if single else s

    def reset_state_variables(self):
        self._v = jnp.full((self._rows, LANES), self.u_rest, jnp.float32)
        self._tr = jnp.zeros((self._rows, LANES), jnp.float32)
        self._s = jnp.zeros(self.shape, jnp.bool_)
        self.selected_maps.clear()

    def _unpad(self, a2d):
        return a2d.reshape(self._n_pad)[: self.n].reshape(self.shape)

    @property
    def neuron_potentials(self):
        return self._unpad(self._v)

    @property
    def traces(self):
        return self._unpad(self._tr)

    @property
    def s(self):
        return self._s


if __name__ == "__main__":
    key = jax.random.PRNGKey(0)

    def numpy_ref(xs, v, tr, *, dt=1.0, tau=15.0, u_rest=-60.0, r=1.0,
                  threshold=-55.0, tau_s=15.0, scale=1.0, near_tol=1e-3):
        a = np.float32(1.0 - dt / tau)
        b = np.float32((dt / tau) * r)
        c = np.float32((dt / tau) * u_rest)
        decay = np.float32(math.exp(-dt / tau_s))
        thr = np.float32(threshold)
        v = v.astype(np.float32).copy()
        tr = tr.astype(np.float32).copy()
        s_all = np.zeros(xs.shape, bool)
        near = np.zeros(v.shape, bool)   # elements that ever grazed the threshold
        for t in range(xs.shape[0]):
            v = (a * v + b * xs[t].astype(np.float32) + c).astype(np.float32)
            near |= np.abs(v - thr) < np.float32(near_tol)
            sp = v >= thr
            v = np.where(sp, np.float32(u_rest), v).astype(np.float32)
            tr = (tr * decay).astype(np.float32)
            tr = np.where(sp, tr + np.float32(scale), tr).astype(np.float32)
            s_all[t] = sp
        return s_all, v, tr, near

    def check(pop, s_kernel, s_ref, v_ref, tr_ref, near):
        s_k = np.asarray(s_kernel)
        # spikes must match exactly except (possibly) where the potential grazed
        # the threshold within fp-rounding distance
        assert np.all((s_k == s_ref) | near), "spike mismatch away from threshold"
        ok = ~near
        np.testing.assert_allclose(np.asarray(pop.neuron_potentials)[ok],
                                   v_ref[ok], rtol=1e-5, atol=1e-4)
        np.testing.assert_allclose(np.asarray(pop.traces)[ok],
                                   tr_ref[ok], rtol=1e-5, atol=1e-4)

    # --- Population 1: small, non lane-aligned n (pad path), fused T=8 ---
    C, H, W = 4, 16, 16
    T = 8
    pop = LIFPopulationJAX((C, H, W))
    key, sub = jax.random.split(key)
    x = jax.random.uniform(sub, (T, C, H, W), jnp.float32, 0.0, 120.0)
    s = pop.forward(x)
    jax.block_until_ready((s, pop._v, pop._tr))

    s_ref, v_ref, tr_ref, near = numpy_ref(
        np.asarray(x), np.full((C, H, W), -60.0, np.float32),
        np.zeros((C, H, W), np.float32))
    check(pop, s, s_ref, v_ref, tr_ref, near)

    # --- stateful single-step call on the same population ---
    key, sub = jax.random.split(key)
    x1 = jax.random.uniform(sub, (C, H, W), jnp.float32, 0.0, 120.0)
    s1 = pop.forward(x1)
    jax.block_until_ready(s1)
    s1_ref, v_ref, tr_ref, near1 = numpy_ref(np.asarray(x1)[None], v_ref, tr_ref)
    check(pop, s1[None], s1_ref, v_ref, tr_ref, near | near1)

    # --- Population 2: lane-aligned n, 2 neuron tiles x 2 time blocks ---
    C2, H2, W2 = 8, 32, 64
    T2 = 48
    pop2 = LIFPopulationJAX((C2, H2, W2))
    key, sub = jax.random.split(key)
    x2 = jax.random.uniform(sub, (T2, C2, H2, W2), jnp.float32, 0.0, 120.0)
    s2 = pop2.forward(x2)
    jax.block_until_ready((s2, pop2._v, pop2._tr))

    s2_ref, v2_ref, tr2_ref, near2 = numpy_ref(
        np.asarray(x2), np.full((C2, H2, W2), -60.0, np.float32),
        np.zeros((C2, H2, W2), np.float32))
    check(pop2, s2, s2_ref, v2_ref, tr2_ref, near2)

    print("KERNEL_OK")
</pallas_src>

<mosaic_0001>
module attributes {stable_mosaic.version = 11 : i64} {
  func.func @kernel(%arg0: i32, %arg1: i32, %arg2: memref<8x32x128xf32, #tpu.memory_space<vmem>>, %arg3: memref<32x128xf32, #tpu.memory_space<vmem>>, %arg4: memref<32x128xf32, #tpu.memory_space<vmem>>, %arg5: memref<8x32x128xi8, #tpu.memory_space<vmem>>, %arg6: memref<32x128xf32, #tpu.memory_space<vmem>>, %arg7: memref<32x128xf32, #tpu.memory_space<vmem>>) attributes {dimension_semantics = [#tpu.dimension_semantics<parallel>, #tpu.dimension_semantics<arbitrary>], iteration_bounds = array<i64: 1, 1>, scalar_prefetch = 0 : i64, scratch_operands = 0 : i64, tpu.core_type = #tpu.core_type<tc>, window_params = [{transform_indices = @transform_0, window_bounds = array<i64: 8, 32, 128>}, {transform_indices = @transform_1, window_bounds = array<i64: 32, 128>}, {transform_indices = @transform_2, window_bounds = array<i64: 32, 128>}, {transform_indices = @transform_3, window_bounds = array<i64: 8, 32, 128>}, {transform_indices = @transform_4, window_bounds = array<i64: 32, 128>}, {transform_indices = @transform_5, window_bounds = array<i64: 32, 128>}]} {
    %c0_i32 = arith.constant 0 : i32
    %0 = arith.cmpi eq, %arg1, %c0_i32 : i32
    %1 = arith.extui %0 : i1 to i32
    %c0_i32_0 = arith.constant 0 : i32
    %2 = arith.cmpi ne, %1, %c0_i32_0 : i32
    scf.if %2 {
      %c0_96 = arith.constant 0 : index
      %c0_97 = arith.constant 0 : index
      %199 = vector.load %arg3[%c0_96, %c0_97] : memref<32x128xf32, #tpu.memory_space<vmem>>, vector<32x128xf32>
      %c0_98 = arith.constant 0 : index
      %c0_99 = arith.constant 0 : index
      %200 = vector.load %arg6[%c0_98, %c0_99] : memref<32x128xf32, #tpu.memory_space<vmem>>, vector<32x128xf32>
      tpu.vector_store %arg6[%c0_98, %c0_99], %199 {strides = array<i32>} : memref<32x128xf32, #tpu.memory_space<vmem>>, vector<32x128xf32>,
      %c0_100 = arith.constant 0 : index
      %c0_101 = arith.constant 0 : index
      %201 = vector.load %arg4[%c0_100, %c0_101] : memref<32x128xf32, #tpu.memory_space<vmem>>, vector<32x128xf32>
      %c0_102 = arith.constant 0 : index
      %c0_103 = arith.constant 0 : index
      %202 = vector.load %arg7[%c0_102, %c0_103] : memref<32x128xf32, #tpu.memory_space<vmem>>, vector<32x128xf32>
      tpu.vector_store %arg7[%c0_102, %c0_103], %201 {strides = array<i32>} : memref<32x128xf32, #tpu.memory_space<vmem>>, vector<32x128xf32>,
    } else {
    }
    %c0 = arith.constant 0 : index
    %c0_1 = arith.constant 0 : index
    %3 = vector.load %arg6[%c0, %c0_1] : memref<32x128xf32, #tpu.memory_space<vmem>>, vector<32x128xf32>
    %c0_2 = arith.constant 0 : index
    %c0_3 = arith.constant 0 : index
    %4 = vector.load %arg7[%c0_2, %c0_3] : memref<32x128xf32, #tpu.memory_space<vmem>>, vector<32x128xf32>
    %c0_i32_4 = arith.constant 0 : i32
    %5 = arith.index_cast %c0_i32_4 : i32 to index
    %c0_5 = arith.constant 0 : index
    %c0_6 = arith.constant 0 : index
    %6 = vector.load %arg2[%5, %c0_5, %c0_6] : memref<8x32x128xf32, #tpu.memory_space<vmem>>, vector<1x32x128xf32>
    %7 = vector.shape_cast %6 : vector<1x32x128xf32> to vector<32x128xf32>
    %cst = arith.constant 0.933333337 : f32
    %8 = vector.broadcast %cst : f32 to vector<32x128xf32>
    %9 = arith.mulf %8, %3 : vector<32x128xf32>
    %cst_7 = arith.constant 0.0666666701 : f32
    %10 = vector.broadcast %cst_7 : f32 to vector<32x128xf32>
    %11 = arith.mulf %10, %7 : vector<32x128xf32>
    %12 = arith.addf %9, %11 : vector<32x128xf32>
    %cst_8 = arith.constant -4.000000e+00 : f32
    %13 = vector.broadcast %cst_8 : f32 to vector<32x128xf32>
    %14 = arith.addf %12, %13 : vector<32x128xf32>
    %cst_9 = arith.constant -5.500000e+01 : f32
    %15 = vector.broadcast %cst_9 : f32 to vector<32x128xf32>
    %16 = arith.cmpf oge, %14, %15 : vector<32x128xf32>
    %17 = arith.extui %16 : vector<32x128xi1> to vector<32x128xi8>
    %18 = arith.index_cast %c0_i32_4 : i32 to index
    %c0_10 = arith.constant 0 : index
    %c0_11 = arith.constant 0 : index
    %19 = vector.load %arg5[%18, %c0_10, %c0_11] : memref<8x32x128xi8, #tpu.memory_space<vmem>>, vector<1x32x128xi8>
    %20 = vector.shape_cast %19 : vector<1x32x128xi8> to vector<32x128xi8>
    %21 = vector.shape_cast %17 : vector<32x128xi8> to vector<1x32x128xi8>
    tpu.vector_store %arg5[%18, %c0_10, %c0_11], %21 {strides = array<i32>} : memref<8x32x128xi8, #tpu.memory_space<vmem>>, vector<1x32x128xi8>,
    %cst_12 = arith.constant -6.000000e+01 : f32
    %22 = vector.broadcast %cst_12 : f32 to vector<32x128xf32>
    %23 = arith.select %16, %22, %14 : vector<32x128xi1>, vector<32x128xf32>
    %cst_13 = arith.constant 0.935506999 : f32
    %24 = vector.broadcast %cst_13 : f32 to vector<32x128xf32>
    %25 = arith.mulf %4, %24 : vector<32x128xf32>
    %cst_14 = arith.constant 1.000000e+00 : f32
    %26 = vector.broadcast %cst_14 : f32 to vector<32x128xf32>
    %27 = arith.addf %25, %26 : vector<32x128xf32>
    %28 = arith.select %16, %27, %25 : vector<32x128xi1>, vector<32x128xf32>
    %c1_i32 = arith.constant 1 : i32
    %29 = arith.index_cast %c1_i32 : i32 to index
    %c0_15 = arith.constant 0 : index
    %c0_16 = arith.constant 0 : index
    %30 = vector.load %arg2[%29, %c0_15, %c0_16] : memref<8x32x128xf32, #tpu.memory_space<vmem>>, vector<1x32x128xf32>
    %31 = vector.shape_cast %30 : vector<1x32x128xf32> to vector<32x128xf32>
    %cst_17 = arith.constant 0.933333337 : f32
    %32 = vector.broadcast %cst_17 : f32 to vector<32x128xf32>
    %33 = arith.mulf %32, %23 : vector<32x128xf32>
    %cst_18 = arith.constant 0.0666666701 : f32
    %34 = vector.broadcast %cst_18 : f32 to vector<32x128xf32>
    %35 = arith.mulf %34, %31 : vector<32x128xf32>
    %36 = arith.addf %33, %35 : vector<32x128xf32>
    %cst_19 = arith.constant -4.000000e+00 : f32
    %37 = vector.broadcast %cst_19 : f32 to vector<32x128xf32>
    %38 = arith.addf %36, %37 : vector<32x128xf32>
    %cst_20 = arith.constant -5.500000e+01 : f32
    %39 = vector.broadcast %cst_20 : f32 to vector<32x128xf32>
    %40 = arith.cmpf oge, %38, %39 : vector<32x128xf32>
    %41 = arith.extui %40 : vector<32x128xi1> to vector<32x128xi8>
    %42 = arith.index_cast %c1_i32 : i32 to index
    %c0_21 = arith.constant 0 : index
    %c0_22 = arith.constant 0 : index
    %43 = vector.load %arg5[%42, %c0_21, %c0_22] : memref<8x32x128xi8, #tpu.memory_space<vmem>>, vector<1x32x128xi8>
    %44 = vector.shape_cast %43 : vector<1x32x128xi8> to vector<32x128xi8>
    %45 = vector.shape_cast %41 : vector<32x128xi8> to vector<1x32x128xi8>
    tpu.vector_store %arg5[%42, %c0_21, %c0_22], %45 {strides = array<i32>} : memref<8x32x128xi8, #tpu.memory_space<vmem>>, vector<1x32x128xi8>,
    %cst_23 = arith.constant -6.000000e+01 : f32
    %46 = vector.broadcast %cst_23 : f32 to vector<32x128xf32>
    %47 = arith.select %40, %46, %38 : vector<32x128xi1>, vector<32x128xf32>
    %cst_24 = arith.constant 0.935506999 : f32
    %48 = vector.broadcast %cst_24 : f32 to vector<32x128xf32>
    %49 = arith.mulf %28, %48 : vector<32x128xf32>
    %cst_25 = arith.constant 1.000000e+00 : f32
    %50 = vector.broadcast %cst_25 : f32 to vector<32x128xf32>
    %51 = arith.addf %49, %50 : vector<32x128xf32>
    %52 = arith.select %40, %51, %49 : vector<32x128xi1>, vector<32x128xf32>
    %c2_i32 = arith.constant 2 : i32
    %53 = arith.index_cast %c2_i32 : i32 to index
    %c0_26 = arith.constant 0 : index
    %c0_27 = arith.constant 0 : index
    %54 = vector.load %arg2[%53, %c0_26, %c0_27] : memref<8x32x128xf32, #tpu.memory_space<vmem>>, vector<1x32x128xf32>
    %55 = vector.shape_cast %54 : vector<1x32x128xf32> to vector<32x128xf32>
    %cst_28 = arith.constant 0.933333337 : f32
    %56 = vector.broadcast %cst_28 : f32 to vector<32x128xf32>
    %57 = arith.mulf %56, %47 : vector<32x128xf32>
    %cst_29 = arith.constant 0.0666666701 : f32
    %58 = vector.broadcast %cst_29 : f32 to vector<32x128xf32>
    %59 = arith.mulf %58, %55 : vector<32x128xf32>
    %60 = arith.addf %57, %59 : vector<32x128xf32>
    %cst_30 = arith.constant -4.000000e+00 : f32
    %61 = vector.broadcast %cst_30 : f32 to vector<32x128xf32>
    %62 = arith.addf %60, %61 : vector<32x128xf32>
    %cst_31 = arith.constant -5.500000e+01 : f32
    %63 = vector.broadcast %cst_31 : f32 to vector<32x128xf32>
    %64 = arith.cmpf oge, %62, %63 : vector<32x128xf32>
    %65 = arith.extui %64 : vector<32x128xi1> to vector<32x128xi8>
    %66 = arith.index_cast %c2_i32 : i32 to index
    %c0_32 = arith.constant 0 : index
    %c0_33 = arith.constant 0 : index
    %67 = vector.load %arg5[%66, %c0_32, %c0_33] : memref<8x32x128xi8, #tpu.memory_space<vmem>>, vector<1x32x128xi8>
    %68 = vector.shape_cast %67 : vector<1x32x128xi8> to vector<32x128xi8>
    %69 = vector.shape_cast %65 : vector<32x128xi8> to vector<1x32x128xi8>
    tpu.vector_store %arg5[%66, %c0_32, %c0_33], %69 {strides = array<i32>} : memref<8x32x128xi8, #tpu.memory_space<vmem>>, vector<1x32x128xi8>,
    %cst_34 = arith.constant -6.000000e+01 : f32
    %70 = vector.broadcast %cst_34 : f32 to vector<32x128xf32>
    %71 = arith.select %64, %70, %62 : vector<32x128xi1>, vector<32x128xf32>
    %cst_35 = arith.constant 0.935506999 : f32
    %72 = vector.broadcast %cst_35 : f32 to vector<32x128xf32>
    %73 = arith.mulf %52, %72 : vector<32x128xf32>
    %cst_36 = arith.constant 1.000000e+00 : f32
    %74 = vector.broadcast %cst_36 : f32 to vector<32x128xf32>
    %75 = arith.addf %73, %74 : vector<32x128xf32>
    %76 = arith.select %64, %75, %73 : vector<32x128xi1>, vector<32x128xf32>
    %c3_i32 = arith.constant 3 : i32
    %77 = arith.index_cast %c3_i32 : i32 to index
    %c0_37 = arith.constant 0 : index
    %c0_38 = arith.constant 0 : index
    %78 = vector.load %arg2[%77, %c0_37, %c0_38] : memref<8x32x128xf32, #tpu.memory_space<vmem>>, vector<1x32x128xf32>
    %79 = vector.shape_cast %78 : vector<1x32x128xf32> to vector<32x128xf32>
    %cst_39 = arith.constant 0.933333337 : f32
    %80 = vector.broadcast %cst_39 : f32 to vector<32x128xf32>
    %81 = arith.mulf %80, %71 : vector<32x128xf32>
    %cst_40 = arith.constant 0.0666666701 : f32
    %82 = vector.broadcast %cst_40 : f32 to vector<32x128xf32>
    %83 = arith.mulf %82, %79 : vector<32x128xf32>
    %84 = arith.addf %81, %83 : vector<32x128xf32>
    %cst_41 = arith.constant -4.000000e+00 : f32
    %85 = vector.broadcast %cst_41 : f32 to vector<32x128xf32>
    %86 = arith.addf %84, %85 : vector<32x128xf32>
    %cst_42 = arith.constant -5.500000e+01 : f32
    %87 = vector.broadcast %cst_42 : f32 to vector<32x128xf32>
    %88 = arith.cmpf oge, %86, %87 : vector<32x128xf32>
    %89 = arith.extui %88 : vector<32x128xi1> to vector<32x128xi8>
    %90 = arith.index_cast %c3_i32 : i32 to index
    %c0_43 = arith.constant 0 : index
    %c0_44 = arith.constant 0 : index
    %91 = vector.load %arg5[%90, %c0_43, %c0_44] : memref<8x32x128xi8, #tpu.memory_space<vmem>>, vector<1x32x128xi8>
    %92 = vector.shape_cast %91 : vector<1x32x128xi8> to vector<32x128xi8>
    %93 = vector.shape_cast %89 : vector<32x128xi8> to vector<1x32x128xi8>
    tpu.vector_store %arg5[%90, %c0_43, %c0_44], %93 {strides = array<i32>} : memref<8x32x128xi8, #tpu.memory_space<vmem>>, vector<1x32x128xi8>,
    %cst_45 = arith.constant -6.000000e+01 : f32
    %94 = vector.broadcast %cst_45 : f32 to vector<32x128xf32>
    %95 = arith.select %88, %94, %86 : vector<32x128xi1>, vector<32x128xf32>
    %cst_46 = arith.constant 0.935506999 : f32
    %96 = vector.broadcast %cst_46 : f32 to vector<32x128xf32>
    %97 = arith.mulf %76, %96 : vector<32x128xf32>
    %cst_47 = arith.constant 1.000000e+00 : f32
    %98 = vector.broadcast %cst_47 : f32 to vector<32x128xf32>
    %99 = arith.addf %97, %98 : vector<32x128xf32>
    %100 = arith.select %88, %99, %97 : vector<32x128xi1>, vector<32x128xf32>
    %c4_i32 = arith.constant 4 : i32
    %101 = arith.index_cast %c4_i32 : i32 to index
    %c0_48 = arith.constant 0 : index
    %c0_49 = arith.constant 0 : index
    %102 = vector.load %arg2[%101, %c0_48, %c0_49] : memref<8x32x128xf32, #tpu.memory_space<vmem>>, vector<1x32x128xf32>
    %103 = vector.shape_cast %102 : vector<1x32x128xf32> to vector<32x128xf32>
    %cst_50 = arith.constant 0.933333337 : f32
    %104 = vector.broadcast %cst_50 : f32 to vector<32x128xf32>
    %105 = arith.mulf %104, %95 : vector<32x128xf32>
    %cst_51 = arith.constant 0.0666666701 : f32
    %106 = vector.broadcast %cst_51 : f32 to vector<32x128xf32>
    %107 = arith.mulf %106, %103 : vector<32x128xf32>
    %108 = arith.addf %105, %107 : vector<32x128xf32>
    %cst_52 = arith.constant -4.000000e+00 : f32
    %109 = vector.broadcast %cst_52 : f32 to vector<32x128xf32>
    %110 = arith.addf %108, %109 : vector<32x128xf32>
    %cst_53 = arith.constant -5.500000e+01 : f32
    %111 = vector.broadcast %cst_53 : f32 to vector<32x128xf32>
    %112 = arith.cmpf oge, %110, %111 : vector<32x128xf32>
    %113 = arith.extui %112 : vector<32x128xi1> to vector<32x128xi8>
    %114 = arith.index_cast %c4_i32 : i32 to index
    %c0_54 = arith.constant 0 : index
    %c0_55 = arith.constant 0 : index
    %115 = vector.load %arg5[%114, %c0_54, %c0_55] : memref<8x32x128xi8, #tpu.memory_space<vmem>>, vector<1x32x128xi8>
    %116 = vector.shape_cast %115 : vector<1x32x128xi8> to vector<32x128xi8>
    %117 = vector.shape_cast %113 : vector<32x128xi8> to vector<1x32x128xi8>
    tpu.vector_store %arg5[%114, %c0_54, %c0_55], %117 {strides = array<i32>} : memref<8x32x128xi8, #tpu.memory_space<vmem>>, vector<1x32x128xi8>,
    %cst_56 = arith.constant -6.000000e+01 : f32
    %118 = vector.broadcast %cst_56 : f32 to vector<32x128xf32>
    %119 = arith.select %112, %118, %110 : vector<32x128xi1>, vector<32x128xf32>
    %cst_57 = arith.constant 0.935506999 : f32
    %120 = vector.broadcast %cst_57 : f32 to vector<32x128xf32>
    %121 = arith.mulf %100, %120 : vector<32x128xf32>
    %cst_58 = arith.constant 1.000000e+00 : f32
    %122 = vector.broadcast %cst_58 : f32 to vector<32x128xf32>
    %123 = arith.addf %121, %122 : vector<32x128xf32>
    %124 = arith.select %112, %123, %121 : vector<32x128xi1>, vector<32x128xf32>
    %c5_i32 = arith.constant 5 : i32
    %125 = arith.index_cast %c5_i32 : i32 to index
    %c0_59 = arith.constant 0 : index
    %c0_60 = arith.constant 0 : index
    %126 = vector.load %arg2[%125, %c0_59, %c0_60] : memref<8x32x128xf32, #tpu.memory_space<vmem>>, vector<1x32x128xf32>
    %127 = vector.shape_cast %126 : vector<1x32x128xf32> to vector<32x128xf32>
    %cst_61 = arith.constant 0.933333337 : f32
    %128 = vector.broadcast %cst_61 : f32 to vector<32x128xf32>
    %129 = arith.mulf %128, %119 : vector<32x128xf32>
    %cst_62 = arith.constant 0.0666666701 : f32
    %130 = vector.broadcast %cst_62 : f32 to vector<32x128xf32>
    %131 = arith.mulf %130, %127 : vector<32x128xf32>
    %132 = arith.addf %129, %131 : vector<32x128xf32>
    %cst_63 = arith.constant -4.000000e+00 : f32
    %133 = vector.broadcast %cst_63 : f32 to vector<32x128xf32>
    %134 = arith.addf %132, %133 : vector<32x128xf32>
    %cst_64 = arith.constant -5.500000e+01 : f32
    %135 = vector.broadcast %cst_64 : f32 to vector<32x128xf32>
    %136 = arith.cmpf oge, %134, %135 : vector<32x128xf32>
    %137 = arith.extui %136 : vector<32x128xi1> to vector<32x128xi8>
    %138 = arith.index_cast %c5_i32 : i32 to index
    %c0_65 = arith.constant 0 : index
    %c0_66 = arith.constant 0 : index
    %139 = vector.load %arg5[%138, %c0_65, %c0_66] : memref<8x32x128xi8, #tpu.memory_space<vmem>>, vector<1x32x128xi8>
    %140 = vector.shape_cast %139 : vector<1x32x128xi8> to vector<32x128xi8>
    %141 = vector.shape_cast %137 : vector<32x128xi8> to vector<1x32x128xi8>
    tpu.vector_store %arg5[%138, %c0_65, %c0_66], %141 {strides = array<i32>} : memref<8x32x128xi8, #tpu.memory_space<vmem>>, vector<1x32x128xi8>,
    %cst_67 = arith.constant -6.000000e+01 : f32
    %142 = vector.broadcast %cst_67 : f32 to vector<32x128xf32>
    %143 = arith.select %136, %142, %134 : vector<32x128xi1>, vector<32x128xf32>
    %cst_68 = arith.constant 0.935506999 : f32
    %144 = vector.broadcast %cst_68 : f32 to vector<32x128xf32>
    %145 = arith.mulf %124, %144 : vector<32x128xf32>
    %cst_69 = arith.constant 1.000000e+00 : f32
    %146 = vector.broadcast %cst_69 : f32 to vector<32x128xf32>
    %147 = arith.addf %145, %146 : vector<32x128xf32>
    %148 = arith.select %136, %147, %145 : vector<32x128xi1>, vector<32x128xf32>
    %c6_i32 = arith.constant 6 : i32
    %149 = arith.index_cast %c6_i32 : i32 to index
    %c0_70 = arith.constant 0 : index
    %c0_71 = arith.constant 0 : index
    %150 = vector.load %arg2[%149, %c0_70, %c0_71] : memref<8x32x128xf32, #tpu.memory_space<vmem>>, vector<1x32x128xf32>
    %151 = vector.shape_cast %150 : vector<1x32x128xf32> to vector<32x128xf32>
    %cst_72 = arith.constant 0.933333337 : f32
    %152 = vector.broadcast %cst_72 : f32 to vector<32x128xf32>
    %153 = arith.mulf %152, %143 : vector<32x128xf32>
    %cst_73 = arith.constant 0.0666666701 : f32
    %154 = vector.broadcast %cst_73 : f32 to vector<32x128xf32>
    %155 = arith.mulf %154, %151 : vector<32x128xf32>
    %156 = arith.addf %153, %155 : vector<32x128xf32>
    %cst_74 = arith.constant -4.000000e+00 : f32
    %157 = vector.broadcast %cst_74 : f32 to vector<32x128xf32>
    %158 = arith.addf %156, %157 : vector<32x128xf32>
    %cst_75 = arith.constant -5.500000e+01 : f32
    %159 = vector.broadcast %cst_75 : f32 to vector<32x128xf32>
    %160 = arith.cmpf oge, %158, %159 : vector<32x128xf32>
    %161 = arith.extui %160 : vector<32x128xi1> to vector<32x128xi8>
    %162 = arith.index_cast %c6_i32 : i32 to index
    %c0_76 = arith.constant 0 : index
    %c0_77 = arith.constant 0 : index
    %163 = vector.load %arg5[%162, %c0_76, %c0_77] : memref<8x32x128xi8, #tpu.memory_space<vmem>>, vector<1x32x128xi8>
    %164 = vector.shape_cast %163 : vector<1x32x128xi8> to vector<32x128xi8>
    %165 = vector.shape_cast %161 : vector<32x128xi8> to vector<1x32x128xi8>
    tpu.vector_store %arg5[%162, %c0_76, %c0_77], %165 {strides = array<i32>} : memref<8x32x128xi8, #tpu.memory_space<vmem>>, vector<1x32x128xi8>,
    %cst_78 = arith.constant -6.000000e+01 : f32
    %166 = vector.broadcast %cst_78 : f32 to vector<32x128xf32>
    %167 = arith.select %160, %166, %158 : vector<32x128xi1>, vector<32x128xf32>
    %cst_79 = arith.constant 0.935506999 : f32
    %168 = vector.broadcast %cst_79 : f32 to vector<32x128xf32>
    %169 = arith.mulf %148, %168 : vector<32x128xf32>
    %cst_80 = arith.constant 1.000000e+00 : f32
    %170 = vector.broadcast %cst_80 : f32 to vector<32x128xf32>
    %171 = arith.addf %169, %170 : vector<32x128xf32>
    %172 = arith.select %160, %171, %169 : vector<32x128xi1>, vector<32x128xf32>
    %c7_i32 = arith.constant 7 : i32
    %173 = arith.index_cast %c7_i32 : i32 to index
    %c0_81 = arith.constant 0 : index
    %c0_82 = arith.constant 0 : index
    %174 = vector.load %arg2[%173, %c0_81, %c0_82] : memref<8x32x128xf32, #tpu.memory_space<vmem>>, vector<1x32x128xf32>
    %175 = vector.shape_cast %174 : vector<1x32x128xf32> to vector<32x128xf32>
    %cst_83 = arith.constant 0.933333337 : f32
    %176 = vector.broadcast %cst_83 : f32 to vector<32x128xf32>
    %177 = arith.mulf %176, %167 : vector<32x128xf32>
    %cst_84 = arith.constant 0.0666666701 : f32
    %178 = vector.broadcast %cst_84 : f32 to vector<32x128xf32>
    %179 = arith.mulf %178, %175 : vector<32x128xf32>
    %180 = arith.addf %177, %179 : vector<32x128xf32>
    %cst_85 = arith.constant -4.000000e+00 : f32
    %181 = vector.broadcast %cst_85 : f32 to vector<32x128xf32>
    %182 = arith.addf %180, %181 : vector<32x128xf32>
    %cst_86 = arith.constant -5.500000e+01 : f32
    %183 = vector.broadcast %cst_86 : f32 to vector<32x128xf32>
    %184 = arith.cmpf oge, %182, %183 : vector<32x128xf32>
    %185 = arith.extui %184 : vector<32x128xi1> to vector<32x128xi8>
    %186 = arith.index_cast %c7_i32 : i32 to index
    %c0_87 = arith.constant 0 : index
    %c0_88 = arith.constant 0 : index
    %187 = vector.load %arg5[%186, %c0_87, %c0_88] : memref<8x32x128xi8, #tpu.memory_space<vmem>>, vector<1x32x128xi8>
    %188 = vector.shape_cast %187 : vector<1x32x128xi8> to vector<32x128xi8>
    %189 = vector.shape_cast %185 : vector<32x128xi8> to vector<1x32x128xi8>
    tpu.vector_store %arg5[%186, %c0_87, %c0_88], %189 {strides = array<i32>} : memref<8x32x128xi8, #tpu.memory_space<vmem>>, vector<1x32x128xi8>,
    %cst_89 = arith.constant -6.000000e+01 : f32
    %190 = vector.broadcast %cst_89 : f32 to vector<32x128xf32>
    %191 = arith.select %184, %190, %182 : vector<32x128xi1>, vector<32x128xf32>
    %cst_90 = arith.constant 0.935506999 : f32
    %192 = vector.broadcast %cst_90 : f32 to vector<32x128xf32>
    %193 = arith.mulf %172, %192 : vector<32x128xf32>
    %cst_91 = arith.constant 1.000000e+00 : f32
    %194 = vector.broadcast %cst_91 : f32 to vector<32x128xf32>
    %195 = arith.addf %193, %194 : vector<32x128xf32>
    %196 = arith.select %184, %195, %193 : vector<32x128xi1>, vector<32x128xf32>
    %c8_i32 = arith.constant 8 : i32
    %c0_92 = arith.constant 0 : index
    %c0_93 = arith.constant 0 : index
    %197 = vector.load %arg6[%c0_92, %c0_93] : memref<32x128xf32, #tpu.memory_space<vmem>>, vector<32x128xf32>
    tpu.vector_store %arg6[%c0_92, %c0_93], %191 {strides = array<i32>} : memref<32x128xf32, #tpu.memory_space<vmem>>, vector<32x128xf32>,
    %c0_94 = arith.constant 0 : index
    %c0_95 = arith.constant 0 : index
    %198 = vector.load %arg7[%c0_94, %c0_95] : memref<32x128xf32, #tpu.memory_space<vmem>>, vector<32x128xf32>
    tpu.vector_store %arg7[%c0_94, %c0_95], %196 {strides = array<i32>} : memref<32x128xf32, #tpu.memory_space<vmem>>, vector<32x128xf32>,
    return
  }
  func.func @transform_0(%arg0: i32, %arg1: i32) -> (i32, i32, i32) {
    %c0_i32 = arith.constant 0 : i32
    %c0_i32_0 = arith.constant 0 : i32
    return %arg1, %arg0, %c0_i32 : i32, i32, i32
  }
  func.func @transform_1(%arg0: i32, %arg1: i32) -> (i32, i32) {
    %c0_i32 = arith.constant 0 : i32
    %c0_i32_0 = arith.constant 0 : i32
    return %arg0, %c0_i32 : i32, i32
  }
  func.func @transform_2(%arg0: i32, %arg1: i32) -> (i32, i32) {
    %c0_i32 = arith.constant 0 : i32
    %c0_i32_0 = arith.constant 0 : i32
    return %arg0, %c0_i32 : i32, i32
  }
  func.func @transform_3(%arg0: i32, %arg1: i32) -> (i32, i32, i32) {
    %c0_i32 = arith.constant 0 : i32
    %c0_i32_0 = arith.constant 0 : i32
    return %arg1, %arg0, %c0_i32 : i32, i32, i32
  }
  func.func @transform_4(%arg0: i32, %arg1: i32) -> (i32, i32) {
    %c0_i32 = arith.constant 0 : i32
    %c0_i32_0 = arith.constant 0 : i32
    return %arg0, %c0_i32 : i32, i32
  }
  func.func @transform_5(%arg0: i32, %arg1: i32) -> (i32, i32) {
    %c0_i32 = arith.constant 0 : i32
    %c0_i32_0 = arith.constant 0 : i32
    return %arg0, %c0_i32 : i32, i32
  }
}

</mosaic_0001>

<bundles_post_ra>
// kernel: sim.1
= control target key start
LH: loop header
LB: loop body
LE: loop exit
PB: predicated region body
PF: predicated region fallthrough
CT: control target
= control target key end

     0   :  { %v618_v51 = vmov 0   ;;  %s1277_s1 = inlined_call_operand.vmem [shape: f32[32,128], index: 1, kind: input, shape index: {}, may-alias: {1,4}]   ;;  %s1278_s0 = inlined_call_operand.vmem [shape: f32[8,32,128], index: 0, kind: input, shape index: {}]   ;;  %s1279_s3 = inlined_call_operand.vmem [shape: s8[8,32,128], index: 3, kind: output, shape index: {0}]   ;;  %s1280_s2 = inlined_call_operand.vmem [shape: f32[32,128], index: 2, kind: input, shape index: {}, may-alias: {2,5}]   ;;  %s1281_s4 = inlined_call_operand.vmem [shape: f32[32,128], index: 4, kind: output, shape index: {1}, may-alias: {1,4}]   ;;  %s1282_s5 = inlined_call_operand.vmem [shape: f32[32,128], index: 5, kind: output, shape index: {2}, may-alias: {2,5}]  }
   0x1   :  { %v23_v0 = vld [vmem:[%s1277_s1] sm:$0xff]  ;;  %v24_v1 = vld [vmem:[%s1277_s1 + $0x8] sm:$0xff]  ;;  %v25_v2 = vld [vmem:[%s1277_s1 + $0x10] sm:$0xff] }
   0x2   :  { %v26_v3 = vld [vmem:[%s1277_s1 + $0x18] sm:$0xff]  ;;  %v47_v4 = vld [vmem:[%s1278_s0] sm:$0xff]  ;;  %v51_v5 = vmul.f32 0.93333334, %v23_v0  ;;  %v52_v6 = vmul.f32 0.93333334, %v24_v1 }
   0x3   :  { %v48_v7 = vld [vmem:[%s1278_s0 + $0x8] sm:$0xff]  ;;  %v49_v8 = vld [vmem:[%s1278_s0 + $0x10] sm:$0xff]  ;;  %v50_v9 = vld [vmem:[%s1278_s0 + $0x18] sm:$0xff]  ;;  %v53_v10 = vmul.f32 0.93333334, %v25_v2 }
   0x4   :  { %v54_v11 = vmul.f32 0.93333334, %v26_v3  ;;  %v55_v12 = vmul.f32 0.06666667, %v47_v4  ;;  %v56_v13 = vmul.f32 0.06666667, %v48_v7 }
   0x5   :  { %v57_v14 = vmul.f32 0.06666667, %v49_v8  ;;  %v58_v15 = vmul.f32 0.06666667, %v50_v9  ;;  %v561_v16 = vld [vmem:[%s1278_s0 + $0x20] sm:$0xff]  ;;  %v562_v17 = vld [vmem:[%s1278_s0 + $0x28] sm:$0xff] }
   0x6   :  { %v59_v18 = vadd.f32 %v55_v12, %v51_v5  ;;  %v60_v19 = vadd.f32 %v56_v13, %v52_v6  ;;  %v563_v20 = vld [vmem:[%s1278_s0 + $0x30] sm:$0xff]  ;;  %v564_v21 = vld [vmem:[%s1278_s0 + $0x38] sm:$0xff]  ;;  %v116_v22 = vmul.f32 0.06666667, %v561_v16  ;;  %v117_v23 = vmul.f32 0.06666667, %v562_v17 }
   0x7   :  { %v61_v24 = vadd.f32 %v57_v14, %v53_v10  ;;  %v62_v25 = vadd.f32 %v58_v15, %v54_v11  ;;  %v118_v26 = vmul.f32 0.06666667, %v563_v20  ;;  %v119_v27 = vmul.f32 0.06666667, %v564_v21  ;;  %v569_v28 = vld [vmem:[%s1278_s0 + $0x40] sm:$0xff]  ;;  %v570_v29 = vld [vmem:[%s1278_s0 + $0x48] sm:$0xff] }
   0x8   :  { %v691_v30 = vadd.f32 -4.0, %v59_v18  ;;  %v693_v31 = vadd.f32 -4.0, %v60_v19  ;;  %v571_v32 = vld [vmem:[%s1278_s0 + $0x50] sm:$0xff]  ;;  %v572_v33 = vld [vmem:[%s1278_s0 + $0x58] sm:$0xff]  ;;  %v701_v34 = vmul.f32 0.06666667, %v569_v28 }
   0x9   :  { %v703_v35 = vadd.f32 -4.0, %v61_v24  ;;  %v705_v36 = vadd.f32 -4.0, %v62_v25  ;;  %v707_v37 = vmul.f32 0.06666667, %v570_v29  ;;  %v709_v38 = vmul.f32 0.06666667, %v571_v32 }
   0xa   :  { %vm67_vm0 = vcmp.ge.f32.partialorder %v691_v30, -55.0  ;;  %vm68_vm1 = vcmp.ge.f32.partialorder %v693_v31, -55.0  ;;  %v713_v39 = vmul.f32 0.06666667, %v572_v33  ;;  %v577_v40 = vld [vmem:[%s1278_s0 + $0x60] sm:$0xff]  ;;  %v578_v43 = vld [vmem:[%s1278_s0 + $0x68] sm:$0xff] }
   0xb   :  { %vm69_vm2 = vcmp.ge.f32.partialorder %v703_v35, -55.0  ;;  %vm70_vm3 = vcmp.ge.f32.partialorder %v705_v36, -55.0  ;;  %vm71_vm4 = vmpackc.low %vm68_vm1, %vm67_vm0  ;;  %v91_v41 = vsel %vm67_vm0, -60.0, %v691_v30  ;;  %v92_v42 = vsel %vm68_vm1, -60.0, %v693_v31  ;;  %v579_v11 = vld [vmem:[%s1278_s0 + $0x70] sm:$0xff]  ;;  %v580_v14 = vld [vmem:[%s1278_s0 + $0x78] sm:$0xff] }
   0xc   :  { %vm72_vm5 = vmpackc.low %vm70_vm3, %vm69_vm2  ;;  %v93_v44 = vsel %vm69_vm2, -60.0, %v703_v35  ;;  %v94_v45 = vsel %vm70_vm3, -60.0, %v705_v36  ;;  %v112_v46 = vmul.f32 0.93333334, %v91_v41  ;;  %v113_v47 = vmul.f32 0.93333334, %v92_v42 }
   0xd   :  { %vm73_vm6 = vmpackc.even %vm72_vm5, %vm71_vm4  ;;  %v114_v48 = vmul.f32 0.93333334, %v93_v44  ;;  %v115_v49 = vmul.f32 0.93333334, %v94_v45  ;;  %v743_v50 = vmul.f32 0.06666667, %v577_v40 }
   0xe   :  { %v74_v52 = vsel %vm73_vm6, 16843009, %v618_v51  ;;  %v120_v53 = vadd.f32 %v116_v22, %v112_v46  ;;  %v121_v54 = vadd.f32 %v117_v23, %v113_v47  ;;  %v746_v55 = vmul.f32 0.06666667, %v578_v43 }
   0xf   :  { %v75_v56 = vunpack.c.0.s8 %v74_v52  ;;  %v76_v57 = vunpack.c.1.s8 %v74_v52  ;;  %v77_v58 = vunpack.c.2.s8 %v74_v52  ;;  %v78_v59 = vunpack.c.3.s8 %v74_v52 }
  0x10   :  { %v122_v60 = vadd.f32 %v118_v26, %v114_v48  ;;  %v123_v61 = vadd.f32 %v119_v27, %v115_v49  ;;  %v748_v62 = vadd.f32 -4.0, %v120_v53  ;;  %v750_v63 = vadd.f32 -4.0, %v121_v54  ;;  %v585_v49 = vld [vmem:[%s1278_s0 + $0x80] sm:$0xff]  ;;  %v586_v54 = vld [vmem:[%s1278_s0 + $0x88] sm:$0xff] }
  0x11   :  { %v79_v0 = vpack.c.b16 %v75_v56, %v75_v56  ;;  %v81_v1 = vpack.c.b16 %v76_v57, %v76_v57  ;;  %v83_v2 = vpack.c.b16 %v77_v58, %v77_v58  ;;  %v85_v3 = vpack.c.b16 %v78_v59, %v78_v59 }
  0x12   :  { %v752_v4 = vadd.f32 -4.0, %v122_v60  ;;  %v754_v5 = vadd.f32 -4.0, %v123_v61  ;;  %vm128_vm7 = vcmp.ge.f32.partialorder %v748_v62, -55.0  ;;  %vm129_vm8 = vcmp.ge.f32.partialorder %v750_v63, -55.0 }
  0x13   :  { %v80_v6 = vpack.c.b8 %v79_v0, %v79_v0  ;;  %v82_v7 = vpack.c.b8 %v81_v1, %v81_v1  ;;  %v84_v8 = vpack.c.b8 %v83_v2, %v83_v2  ;;  %v86_v9 = vpack.c.b8 %v85_v3, %v85_v3  ;;  %vm762_vm9 = vmpackc.low %vm129_vm8, %vm128_vm7 }
  0x14   :  { %vm130_vm10 = vcmp.ge.f32.partialorder %v752_v4, -55.0  ;;  %vm131_vm11 = vcmp.ge.f32.partialorder %v754_v5, -55.0  ;;  %v153_v12 = vsel %vm128_vm7, -60.0, %v748_v62  ;;  %v154_v13 = vsel %vm129_vm8, -60.0, %v750_v63 }
  0x15   :  { %87 = vst [vmem:[%s1279_s3] sm:$0x3] %v80_v6  ;;  %88 = vst [vmem:[%s1279_s3 + $0x2] sm:$0x3] %v82_v7  ;;  %v155_v15 = vsel %vm130_vm10, -60.0, %v752_v4  ;;  %v156_v16 = vsel %vm131_vm11, -60.0, %v754_v5 }
  0x16   :  { %89 = vst [vmem:[%s1279_s3 + $0x4] sm:$0x3] %v84_v8  ;;  %90 = vst [vmem:[%s1279_s3 + $0x6] sm:$0x3] %v86_v9  ;;  %v174_v17 = vmul.f32 0.93333334, %v153_v12 }
  0x17   :  { %vm133_vm12 = vmpackc.low %vm131_vm11, %vm130_vm10  ;;  %v175_v18 = vmul.f32 0.93333334, %v154_v13  ;;  %v176_v19 = vmul.f32 0.93333334, %v155_v15  ;;  %v177_v20 = vmul.f32 0.93333334, %v156_v16 }
  0x18   :  { %vm134_vm13 = vmpackc.even %vm133_vm12, %vm762_vm9  ;;  %v242_v21 = vmul.f32 0.06666667, %v579_v11  ;;  %v182_v23 = vadd.f32 %v701_v34, %v174_v17  ;;  %v243_v25 = vmul.f32 0.06666667, %v580_v14  ;;  %v302_v0 = vmul.f32 0.06666667, %v585_v49 }
  0x19   :  { %v135_v22 = vsel %vm134_vm13, 16843009, %v618_v51  ;;  %v183_v24 = vadd.f32 %v707_v37, %v175_v18  ;;  %v184_v32 = vadd.f32 %v709_v38, %v176_v19  ;;  %v185_v33 = vadd.f32 %v713_v39, %v177_v20 }
  0x1a   :  { %v136_v26 = vunpack.c.0.s8 %v135_v22  ;;  %v137_v27 = vunpack.c.1.s8 %v135_v22  ;;  %v138_v28 = vunpack.c.2.s8 %v135_v22  ;;  %v139_v29 = vunpack.c.3.s8 %v135_v22 }
  0x1b   :  { %v809_v40 = vadd.f32 -4.0, %v182_v23  ;;  %v811_v41 = vadd.f32 -4.0, %v183_v24  ;;  %v813_v34 = vadd.f32 -4.0, %v184_v32  ;;  %v815_v37 = vadd.f32 -4.0, %v185_v33  ;;  %v587_v24 = vld [vmem:[%s1278_s0 + $0x90] sm:$0xff] }
  0x1c   :  { %v140_v42 = vpack.c.b16 %v136_v26, %v136_v26  ;;  %v142_v43 = vpack.c.b16 %v137_v27, %v137_v27  ;;  %v144_v44 = vpack.c.b16 %v138_v28, %v138_v28  ;;  %v146_v45 = vpack.c.b16 %v139_v29, %v139_v29  ;;  %v588_v27 = vld [vmem:[%s1278_s0 + $0x98] sm:$0xff] }
  0x1d   :  { %vm190_vm14 = vcmp.ge.f32.partialorder %v809_v40, -55.0  ;;  %vm191_vm15 = vcmp.ge.f32.partialorder %v811_v41, -55.0  ;;  %vm192_vm5 = vcmp.ge.f32.partialorder %v813_v34, -55.0  ;;  %vm1283_vm6 = vcmp.ge.f32.partialorder %v815_v37, -55.0 }
  0x1e   :  { %v141_v46 = vpack.c.b8 %v140_v42, %v140_v42  ;;  %v143_v38 = vpack.c.b8 %v142_v43, %v142_v43  ;;  %v145_v47 = vpack.c.b8 %v144_v44, %v144_v44  ;;  %v147_v39 = vpack.c.b8 %v146_v45, %v146_v45  ;;  %vm823_vm4 = vmpackc.low %vm191_vm15, %vm190_vm14 }
  0x1f   :  { %v215_v52 = vsel %vm190_vm14, -60.0, %v809_v40  ;;  %v216_v53 = vsel %vm191_vm15, -60.0, %v811_v41  ;;  %vm195_vm9 = vmpackc.low %vm1283_vm6, %vm192_vm5  ;;  %v217_v56 = vsel %vm192_vm5, -60.0, %v813_v34  ;;  %v218_v57 = vsel %vm1283_vm6, -60.0, %v815_v37 }
  0x20   :  { %565 = vst [vmem:[%s1279_s3 + $0x8] sm:$0x3] %v141_v46  ;;  %566 = vst [vmem:[%s1279_s3 + $0xa] sm:$0x3] %v143_v38  ;;  %v236_v58 = vmul.f32 0.93333334, %v215_v52 }
  0x21   :  { %567 = vst [vmem:[%s1279_s3 + $0xc] sm:$0x3] %v145_v47  ;;  %568 = vst [vmem:[%s1279_s3 + $0xe] sm:$0x3] %v147_v39  ;;  %v237_v59 = vmul.f32 0.93333334, %v216_v53 }
  0x22   :  { %vm196_vm12 = vmpackc.even %vm195_vm9, %vm823_vm4  ;;  %v238_v60 = vmul.f32 0.93333334, %v217_v56  ;;  %v239_v61 = vmul.f32 0.93333334, %v218_v57  ;;  %v244_v2 = vadd.f32 %v743_v50, %v236_v58  ;;  %v303_v6 = vmul.f32 0.06666667, %v586_v54 }
  0x23   :  { %v197_v1 = vsel %vm196_vm12, 16843009, %v618_v51  ;;  %v245_v3 = vadd.f32 %v746_v55, %v237_v59  ;;  %v304_v44 = vmul.f32 0.06666667, %v587_v24  ;;  %v305_v46 = vmul.f32 0.06666667, %v588_v27 }
  0x24   :  { %v198_v7 = vunpack.c.0.s8 %v197_v1  ;;  %v199_v8 = vunpack.c.1.s8 %v197_v1  ;;  %v200_v9 = vunpack.c.2.s8 %v197_v1  ;;  %v201_v10 = vunpack.c.3.s8 %v197_v1 }
  0x25   :  { %v246_v11 = vadd.f32 %v242_v21, %v238_v60  ;;  %v247_v12 = vadd.f32 %v243_v25, %v239_v61  ;;  %v868_v13 = vadd.f32 -4.0, %v244_v2  ;;  %v870_v14 = vadd.f32 -4.0, %v245_v3 }
  0x26   :  { %v202_v15 = vpack.c.b16 %v198_v7, %v198_v7  ;;  %v204_v16 = vpack.c.b16 %v199_v8, %v199_v8  ;;  %v206_v17 = vpack.c.b16 %v200_v9, %v200_v9  ;;  %v208_v18 = vpack.c.b16 %v201_v10, %v201_v10  ;;  %v593_v9 = vld [vmem:[%s1278_s0 + $0xa0] sm:$0xff]  ;;  %v594_v10 = vld [vmem:[%s1278_s0 + $0xa8] sm:$0xff] }
  0x27   :  { %v872_v19 = vadd.f32 -4.0, %v246_v11  ;;  %v874_v50 = vadd.f32 -4.0, %v247_v12  ;;  %vm1285_vm13 = vcmp.ge.f32.partialorder %v868_v13, -55.0  ;;  %vm1284_vm4 = vcmp.ge.f32.partialorder %v870_v14, -55.0 }
  0x28   :  { %v203_v55 = vpack.c.b8 %v202_v15, %v202_v15  ;;  %v205_v20 = vpack.c.b8 %v204_v16, %v204_v16  ;;  %v207_v21 = vpack.c.b8 %v206_v17, %v206_v17  ;;  %v209_v22 = vpack.c.b8 %v208_v18, %v208_v18  ;;  %vm882_vm9 = vmpackc.low %vm1284_vm4, %vm1285_vm13  ;;  %v595_v15 = vld [vmem:[%s1278_s0 + $0xb0] sm:$0xff]  ;;  %v596_v16 = vld [vmem:[%s1278_s0 + $0xb8] sm:$0xff] }
  0x29   :  { %vm1287_vm12 = vcmp.ge.f32.partialorder %v872_v19, -55.0  ;;  %vm1286_vm6 = vcmp.ge.f32.partialorder %v874_v50, -55.0  ;;  %v277_v25 = vsel %vm1285_vm13, -60.0, %v868_v13  ;;  %v278_v26 = vsel %vm1284_vm4, -60.0, %v870_v14 }
  0x2a   :  { %573 = vst [vmem:[%s1279_s3 + $0x10] sm:$0x3] %v203_v55  ;;  %574 = vst [vmem:[%s1279_s3 + $0x12] sm:$0x3] %v205_v20  ;;  %v279_v28 = vsel %vm1287_vm12, -60.0, %v872_v19  ;;  %v280_v29 = vsel %vm1286_vm6, -60.0, %v874_v50 }
  0x2b   :  { %575 = vst [vmem:[%s1279_s3 + $0x14] sm:$0x3] %v207_v21  ;;  %576 = vst [vmem:[%s1279_s3 + $0x16] sm:$0x3] %v209_v22  ;;  %v298_v32 = vmul.f32 0.93333334, %v277_v25 }
  0x2c   :  { %vm257_vm4 = vmpackc.low %vm1286_vm6, %vm1287_vm12  ;;  %v299_v33 = vmul.f32 0.93333334, %v278_v26  ;;  %v300_v42 = vmul.f32 0.93333334, %v279_v28  ;;  %v301_v43 = vmul.f32 0.93333334, %v280_v29 }
  0x2d   :  { %vm258_vm13 = vmpackc.even %vm257_vm4, %vm882_vm9  ;;  %v306_v38 = vadd.f32 %v302_v0, %v298_v32  ;;  %v364_v23 = vmul.f32 0.06666667, %v593_v9  ;;  %v365_v25 = vmul.f32 0.06666667, %v594_v10  ;;  %v366_v26 = vmul.f32 0.06666667, %v595_v15 }
  0x2e   :  { %v259_v45 = vsel %vm258_vm13, 16843009, %v618_v51  ;;  %v307_v47 = vadd.f32 %v303_v6, %v299_v33  ;;  %v308_v53 = vadd.f32 %v304_v44, %v300_v42  ;;  %v309_v54 = vadd.f32 %v305_v46, %v301_v43 }
  0x2f   :  { %v260_v39 = vunpack.c.0.s8 %v259_v45  ;;  %v261_v48 = vunpack.c.1.s8 %v259_v45  ;;  %v262_v49 = vunpack.c.2.s8 %v259_v45  ;;  %v263_v52 = vunpack.c.3.s8 %v259_v45 }
  0x30   :  { %v925_v56 = vadd.f32 -4.0, %v306_v38  ;;  %v927_v57 = vadd.f32 -4.0, %v307_v47  ;;  %v929_v1 = vadd.f32 -4.0, %v308_v53  ;;  %v931_v2 = vadd.f32 -4.0, %v309_v54  ;;  %v601_v53 = vld [vmem:[%s1278_s0 + $0xc0] sm:$0xff] }
  0x31   :  { %v264_v58 = vpack.c.b16 %v260_v39, %v260_v39  ;;  %v266_v59 = vpack.c.b16 %v261_v48, %v261_v48  ;;  %v268_v60 = vpack.c.b16 %v262_v49, %v262_v49  ;;  %v270_v61 = vpack.c.b16 %v263_v52, %v263_v52 }
  0x32   :  { %vm1289_vm13 = vcmp.ge.f32.partialorder %v925_v56, -55.0  ;;  %vm1288_vm4 = vcmp.ge.f32.partialorder %v927_v57, -55.0  ;;  %vm1291_vm6 = vcmp.ge.f32.partialorder %v929_v1, -55.0  ;;  %vm1290_vm12 = vcmp.ge.f32.partialorder %v931_v2, -55.0 }
  0x33   :  { %v265_v0 = vpack.c.b8 %v264_v58, %v264_v58  ;;  %v267_v3 = vpack.c.b8 %v266_v59, %v266_v59  ;;  %v269_v6 = vpack.c.b8 %v268_v60, %v268_v60  ;;  %v271_v7 = vpack.c.b8 %v270_v61, %v270_v61  ;;  %vm939_vm9 = vmpackc.low %vm1288_vm4, %vm1289_vm13  ;;  %v602_v61 = vld [vmem:[%s1278_s0 + $0xc8] sm:$0xff] }
  0x34   :  { %v339_v11 = vsel %vm1289_vm13, -60.0, %v925_v56  ;;  %v340_v12 = vsel %vm1288_vm4, -60.0, %v927_v57  ;;  %vm319_vm4 = vmpackc.low %vm1290_vm12, %vm1291_vm6  ;;  %v341_v17 = vsel %vm1291_vm6, -60.0, %v929_v1  ;;  %v342_v18 = vsel %vm1290_vm12, -60.0, %v931_v2 }
  0x35   :  { %581 = vst [vmem:[%s1279_s3 + $0x18] sm:$0x3] %v265_v0  ;;  %582 = vst [vmem:[%s1279_s3 + $0x1a] sm:$0x3] %v267_v3  ;;  %v360_v55 = vmul.f32 0.93333334, %v339_v11 }
  0x36   :  { %583 = vst [vmem:[%s1279_s3 + $0x1c] sm:$0x3] %v269_v6  ;;  %584 = vst [vmem:[%s1279_s3 + $0x1e] sm:$0x3] %v271_v7  ;;  %v361_v20 = vmul.f32 0.93333334, %v340_v12 }
  0x37   :  { %vm320_vm13 = vmpackc.even %vm319_vm4, %vm939_vm9  ;;  %v362_v21 = vmul.f32 0.93333334, %v341_v17  ;;  %v363_v22 = vmul.f32 0.93333334, %v342_v18  ;;  %v367_v33 = vmul.f32 0.06666667, %v596_v16  ;;  %v368_v42 = vadd.f32 %v364_v23, %v360_v55 }
  0x38   :  { %v321_v24 = vsel %vm320_vm13, 16843009, %v618_v51  ;;  %v369_v43 = vadd.f32 %v365_v25, %v361_v20  ;;  %v603_v3 = vld [vmem:[%s1278_s0 + $0xd0] sm:$0xff]  ;;  %v604_v6 = vld [vmem:[%s1278_s0 + $0xd8] sm:$0xff]  ;;  %v426_v11 = vmul.f32 0.06666667, %v601_v53 }
  0x39   :  { %v322_v27 = vunpack.c.0.s8 %v321_v24  ;;  %v323_v28 = vunpack.c.1.s8 %v321_v24  ;;  %v324_v29 = vunpack.c.2.s8 %v321_v24  ;;  %v325_v32 = vunpack.c.3.s8 %v321_v24  ;;  %v609_v12 = vld [vmem:[%s1278_s0 + $0xe0] sm:$0xff]  ;;  %v610_v17 = vld [vmem:[%s1278_s0 + $0xe8] sm:$0xff]  ;;  %v611_v7 = vld [vmem:[%s1278_s0 + $0xf0] sm:$0xff] }
  0x3a   :  { %v370_v44 = vadd.f32 %v366_v26, %v362_v21  ;;  %v371_v39 = vadd.f32 %v367_v33, %v363_v22  ;;  %v988_v48 = vadd.f32 -4.0, %v368_v42  ;;  %v990_v49 = vadd.f32 -4.0, %v369_v43 }
  0x3b   :  { %v326_v45 = vpack.c.b16 %v322_v27, %v322_v27  ;;  %v328_v46 = vpack.c.b16 %v323_v28, %v323_v28  ;;  %v330_v38 = vpack.c.b16 %v324_v29, %v324_v29  ;;  %v332_v47 = vpack.c.b16 %v325_v32, %v325_v32 }
  0x3c   :  { %v992_v52 = vadd.f32 -4.0, %v370_v44  ;;  %v1000_v0 = vadd.f32 -4.0, %v371_v39  ;;  %vm1293_vm13 = vcmp.ge.f32.partialorder %v988_v48, -55.0  ;;  %vm1292_vm4 = vcmp.ge.f32.partialorder %v990_v49, -55.0 }
  0x3d   :  { %v327_v54 = vpack.c.b8 %v326_v45, %v326_v45  ;;  %v329_v58 = vpack.c.b8 %v328_v46, %v328_v46  ;;  %v331_v59 = vpack.c.b8 %v330_v38, %v330_v38  ;;  %v333_v60 = vpack.c.b8 %v332_v47, %v332_v47  ;;  %vm1027_vm12 = vmpackc.low %vm1292_vm4, %vm1293_vm13 }
  0x3e   :  { %vm1295_vm9 = vcmp.ge.f32.partialorder %v992_v52, -55.0  ;;  %v401_v8 = vsel %vm1293_vm13, -60.0, %v988_v48  ;;  %v402_v9 = vsel %vm1292_vm4, -60.0, %v990_v49  ;;  %vm1294_vm6 = vcmp.ge.f32.partialorder %v1000_v0, -55.0 }
  0x3f   :  { %589 = vst [vmem:[%s1279_s3 + $0x20] sm:$0x3] %v327_v54  ;;  %590 = vst [vmem:[%s1279_s3 + $0x22] sm:$0x3] %v329_v58  ;;  %v403_v10 = vsel %vm1295_vm9, -60.0, %v992_v52  ;;  %v404_v18 = vsel %vm1294_vm6, -60.0, %v1000_v0 }
  0x40   :  { %591 = vst [vmem:[%s1279_s3 + $0x24] sm:$0x3] %v331_v59  ;;  %592 = vst [vmem:[%s1279_s3 + $0x26] sm:$0x3] %v333_v60  ;;  %v422_v15 = vmul.f32 0.93333334, %v401_v8 }
  0x41   :  { %v423_v16 = vmul.f32 0.93333334, %v402_v9  ;;  %vm381_vm4 = vmpackc.low %vm1294_vm6, %vm1295_vm9  ;;  %v424_v55 = vmul.f32 0.93333334, %v403_v10  ;;  %v427_v20 = vmul.f32 0.06666667, %v602_v61 }
  0x42   :  { %vm382_vm13 = vmpackc.even %vm381_vm4, %vm1027_vm12  ;;  %v425_v21 = vmul.f32 0.93333334, %v404_v18  ;;  %v428_v22 = vmul.f32 0.06666667, %v603_v3  ;;  %v429_v23 = vmul.f32 0.06666667, %v604_v6  ;;  %v430_v24 = vadd.f32 %v426_v11, %v422_v15 }
  0x43   :  { %v383_v25 = vsel %vm382_vm13, 16843009, %v618_v51  ;;  %v431_v26 = vadd.f32 %v427_v20, %v423_v16  ;;  %v488_v27 = vmul.f32 0.06666667, %v609_v12  ;;  %v489_v28 = vmul.f32 0.06666667, %v610_v17 }
  0x44   :  { %v384_v29 = vunpack.c.0.s8 %v383_v25  ;;  %v385_v32 = vunpack.c.1.s8 %v383_v25  ;;  %v386_v33 = vunpack.c.2.s8 %v383_v25  ;;  %v387_v42 = vunpack.c.3.s8 %v383_v25  ;;  %v612_v10 = vld [vmem:[%s1278_s0 + $0xf8] sm:$0xff] }
  0x45   :  { %v432_v43 = vadd.f32 %v428_v22, %v424_v55  ;;  %v433_v44 = vadd.f32 %v429_v23, %v425_v21  ;;  %v1057_v45 = vadd.f32 -4.0, %v430_v24  ;;  %v1059_v46 = vadd.f32 -4.0, %v431_v26 }
  0x46   :  { %v388_v38 = vpack.c.b16 %v384_v29, %v384_v29  ;;  %v390_v47 = vpack.c.b16 %v385_v32, %v385_v32  ;;  %v392_v39 = vpack.c.b16 %v386_v33, %v386_v33  ;;  %v394_v53 = vpack.c.b16 %v387_v42, %v387_v42 }
  0x47   :  { %v1061_v54 = vadd.f32 -4.0, %v432_v43  ;;  %v1063_v58 = vadd.f32 -4.0, %v433_v44  ;;  %vm1297_vm12 = vcmp.ge.f32.partialorder %v1057_v45, -55.0  ;;  %vm1296_vm13 = vcmp.ge.f32.partialorder %v1059_v46, -55.0 }
  0x48   :  { %v389_v59 = vpack.c.b8 %v388_v38, %v388_v38  ;;  %v391_v60 = vpack.c.b8 %v390_v47, %v390_v47  ;;  %v393_v61 = vpack.c.b8 %v392_v39, %v392_v39  ;;  %v395_v3 = vpack.c.b8 %v394_v53, %v394_v53  ;;  %vm1071_vm4 = vmpackc.low %vm1296_vm13, %vm1297_vm12 }
  0x49   :  { %vm1299_vm6 = vcmp.ge.f32.partialorder %v1061_v54, -55.0  ;;  %vm1298_vm9 = vcmp.ge.f32.partialorder %v1063_v58, -55.0  ;;  %v463_v8 = vsel %vm1297_vm12, -60.0, %v1057_v45  ;;  %v464_v9 = vsel %vm1296_vm13, -60.0, %v1059_v46 }
  0x4a   :  { %597 = vst [vmem:[%s1279_s3 + $0x28] sm:$0x3] %v389_v59  ;;  %598 = vst [vmem:[%s1279_s3 + $0x2a] sm:$0x3] %v391_v60  ;;  %v484_v11 = vmul.f32 0.93333334, %v463_v8 }
  0x4b   :  { %599 = vst [vmem:[%s1279_s3 + $0x2c] sm:$0x3] %v393_v61  ;;  %600 = vst [vmem:[%s1279_s3 + $0x2e] sm:$0x3] %v395_v3  ;;  %v485_v12 = vmul.f32 0.93333334, %v464_v9 }
  0x4c   :  { %vm443_vm13 = vmpackc.low %vm1298_vm9, %vm1299_vm6  ;;  %v465_v15 = vsel %vm1299_vm6, -60.0, %v1061_v54  ;;  %v466_v16 = vsel %vm1298_vm9, -60.0, %v1063_v58  ;;  %v490_v18 = vmul.f32 0.06666667, %v611_v7  ;;  %v492_v21 = vadd.f32 %v488_v27, %v484_v11  ;;  %v31_v27 = vld [vmem:[%s1280_s2] sm:$0xff]  ;;  %v33_v60 = vld [vmem:[%s1280_s2 + $0x10] sm:$0xff] }
  0x4d   :  { %vm444_vm12 = vmpackc.even %vm443_vm13, %vm1071_vm4  ;;  %v486_v17 = vmul.f32 0.93333334, %v465_v15  ;;  %v487_v55 = vmul.f32 0.93333334, %v466_v16  ;;  %v493_v22 = vadd.f32 %v489_v28, %v485_v12  ;;  %v491_v23 = vmul.f32 0.06666667, %v612_v10 }
  0x4e   :  { %v445_v20 = vsel %vm444_vm12, 16843009, %v618_v51  ;;  %v1114_v32 = vadd.f32 -4.0, %v492_v21  ;;  %v32_v28 = vld [vmem:[%s1280_s2 + $0x8] sm:$0xff]  ;;  %v34_v61 = vld [vmem:[%s1280_s2 + $0x18] sm:$0xff] }
  0x4f   :  { %v446_v24 = vunpack.c.0.s8 %v445_v20  ;;  %v447_v25 = vunpack.c.1.s8 %v445_v20  ;;  %v448_v26 = vunpack.c.2.s8 %v445_v20  ;;  %v449_v29 = vunpack.c.3.s8 %v445_v20 }
  0x50   :  { %v1116_v33 = vadd.f32 -4.0, %v493_v22  ;;  %v494_v42 = vadd.f32 %v490_v18, %v486_v17  ;;  %v495_v43 = vadd.f32 %v491_v23, %v487_v55  ;;  %vm1301_vm12 = vcmp.ge.f32.partialorder %v1114_v32, -55.0 }
  0x51   :  { %v450_v44 = vpack.c.b16 %v446_v24, %v446_v24  ;;  %v452_v38 = vpack.c.b16 %v447_v25, %v447_v25  ;;  %v454_v47 = vpack.c.b16 %v448_v26, %v448_v26  ;;  %v456_v39 = vpack.c.b16 %v449_v29, %v449_v29 }
  0x52   :  { %vm1300_vm13 = vcmp.ge.f32.partialorder %v1116_v33, -55.0  ;;  %v1126_v53 = vadd.f32 -4.0, %v494_v42  ;;  %v1128_v59 = vadd.f32 -4.0, %v495_v43  ;;  %v525_v10 = vsel %vm1301_vm12, -60.0, %v1114_v32 }
  0x53   :  { %v451_v3 = vpack.c.b8 %v450_v44, %v450_v44  ;;  %v453_v6 = vpack.c.b8 %v452_v38, %v452_v38  ;;  %v455_v7 = vpack.c.b8 %v454_v47, %v454_v47  ;;  %v457_v8 = vpack.c.b8 %v456_v39, %v456_v39  ;;  %vm1140_vm4 = vmpackc.low %vm1300_vm13, %vm1301_vm12  ;;  %541 = vst [vmem:[%s1281_s4] sm:$0xff] %v525_v10 }
  0x54   :  { %v526_v11 = vsel %vm1300_vm13, -60.0, %v1116_v33  ;;  %vm502_vm9 = vcmp.ge.f32.partialorder %v1126_v53, -55.0  ;;  %vm503_vm6 = vcmp.ge.f32.partialorder %v1128_v59, -55.0  ;;  %v95_v16 = vmul.f32 0.935507, %v31_v27 }
  0x55   :  { %605 = vst [vmem:[%s1279_s3 + $0x30] sm:$0x3] %v451_v3  ;;  %606 = vst [vmem:[%s1279_s3 + $0x32] sm:$0x3] %v453_v6  ;;  %v527_v12 = vsel %vm502_vm9, -60.0, %v1126_v53  ;;  %v528_v15 = vsel %vm503_vm6, -60.0, %v1128_v59 }
  0x56   :  { %607 = vst [vmem:[%s1279_s3 + $0x34] sm:$0x3] %v455_v7  ;;  %608 = vst [vmem:[%s1279_s3 + $0x36] sm:$0x3] %v457_v8  ;;  %v96_v17 = vmul.f32 0.935507, %v32_v28 }
  0x57   :  { %542 = vst [vmem:[%s1281_s4 + $0x8] sm:$0xff] %v526_v11  ;;  %vm505_vm13 = vmpackc.low %vm503_vm6, %vm502_vm9  ;;  %v97_v18 = vmul.f32 0.935507, %v33_v60  ;;  %v98_v55 = vmul.f32 0.935507, %v34_v61  ;;  %v99_v20 = vadd.f32 1.0, %v95_v16 }
  0x58   :  { %543 = vst [vmem:[%s1281_s4 + $0x10] sm:$0xff] %v527_v12  ;;  %544 = vst [vmem:[%s1281_s4 + $0x18] sm:$0xff] %v528_v15  ;;  %v100_v21 = vadd.f32 1.0, %v96_v17 }
  0x59   :  { %vm506_vm12 = vmpackc.even %vm505_vm13, %vm1140_vm4  ;;  %v101_v23 = vadd.f32 1.0, %v97_v18  ;;  %v102_v24 = vadd.f32 1.0, %v98_v55  ;;  %v103_v29 = vsel %vm67_vm0, %v99_v20, %v95_v16  ;;  %vm1316_vm0 = vcmp.ge.f32.partialorder %v815_v37, -55.0 }
  0x5a   :  { %v507_v22 = vsel %vm506_vm12, 16843009, %v618_v51  ;;  %v104_v42 = vsel %vm68_vm1, %v100_v21, %v96_v17  ;;  %v157_v38 = vmul.f32 0.935507, %v103_v29  ;;  %vm1317_vm1 = vcmp.ge.f32.partialorder %v868_v13, -55.0 }
  0x5b   :  { %v508_v25 = vunpack.c.0.s8 %v507_v22  ;;  %v509_v26 = vunpack.c.1.s8 %v507_v22  ;;  %v510_v43 = vunpack.c.2.s8 %v507_v22  ;;  %v511_v44 = vunpack.c.3.s8 %v507_v22 }
  0x5c   :  { %v158_v47 = vmul.f32 0.935507, %v104_v42  ;;  %v105_v39 = vsel %vm69_vm2, %v101_v23, %v97_v18  ;;  %v106_v51 = vsel %vm70_vm3, %v102_v24, %v98_v55  ;;  %v161_v3 = vadd.f32 1.0, %v157_v38 }
  0x5d   :  { %v159_v27 = vmul.f32 0.935507, %v105_v39  ;;  %v160_v28 = vmul.f32 0.935507, %v106_v51  ;;  %v512_v60 = vpack.c.b16 %v508_v25, %v508_v25  ;;  %v514_v61 = vpack.c.b16 %v509_v26, %v509_v26 }
  0x5e   :  { %v162_v30 = vadd.f32 1.0, %v158_v47  ;;  %v516_v6 = vpack.c.b16 %v510_v43, %v510_v43  ;;  %v518_v7 = vpack.c.b16 %v511_v44, %v511_v44  ;;  %v165_v11 = vsel %vm128_vm7, %v161_v3, %v157_v38 }
  0x5f   :  { %v163_v31 = vadd.f32 1.0, %v159_v27  ;;  %v164_v8 = vadd.f32 1.0, %v160_v28  ;;  %v513_v9 = vpack.c.b8 %v512_v60, %v512_v60  ;;  %v515_v10 = vpack.c.b8 %v514_v61, %v514_v61 }
  0x60   :  { %v166_v35 = vsel %vm129_vm8, %v162_v30, %v158_v47  ;;  %v517_v36 = vpack.c.b8 %v516_v6, %v516_v6  ;;  %v519_v12 = vpack.c.b8 %v518_v7, %v518_v7  ;;  %v219_v15 = vmul.f32 0.935507, %v165_v11 }
  0x61   :  { %v220_v16 = vmul.f32 0.935507, %v166_v35  ;;  %v167_v17 = vsel %vm130_vm10, %v163_v31, %v159_v27  ;;  %v168_v18 = vsel %vm131_vm11, %v164_v8, %v160_v28  ;;  %613 = vst [vmem:[%s1279_s3 + $0x38] sm:$0x3] %v513_v9  ;;  %614 = vst [vmem:[%s1279_s3 + $0x3a] sm:$0x3] %v515_v10 }
  0x62   :  { %v221_v62 = vmul.f32 0.935507, %v167_v17  ;;  %v222_v63 = vmul.f32 0.935507, %v168_v18  ;;  %615 = vst [vmem:[%s1279_s3 + $0x3c] sm:$0x3] %v517_v36 }
  0x63   :  { %616 = vst [vmem:[%s1279_s3 + $0x3e] sm:$0x3] %v519_v12  ;;  %v223_v4 = vadd.f32 1.0, %v219_v15  ;;  %v224_v5 = vadd.f32 1.0, %v220_v16  ;;  %vm1318_vm2 = vcmp.ge.f32.partialorder %v870_v14, -55.0  ;;  %vm1319_vm3 = vcmp.ge.f32.partialorder %v872_v19, -55.0 }
  0x64   :  { %v225_v55 = vadd.f32 1.0, %v221_v62  ;;  %v226_v20 = vadd.f32 1.0, %v222_v63  ;;  %vm1320_vm7 = vcmp.ge.f32.partialorder %v874_v50, -55.0  ;;  %vm1321_vm8 = vcmp.ge.f32.partialorder %v925_v56, -55.0 }
  0x65   :  { %v227_v21 = vsel %vm190_vm14, %v223_v4, %v219_v15  ;;  %v228_v22 = vsel %vm191_vm15, %v224_v5, %v220_v16  ;;  %vm1322_vm10 = vcmp.ge.f32.partialorder %v927_v57, -55.0  ;;  %vm1323_vm11 = vcmp.ge.f32.partialorder %v929_v1, -55.0 }
  0x66   :  { %v281_v23 = vmul.f32 0.935507, %v227_v21  ;;  %v282_v24 = vmul.f32 0.935507, %v228_v22  ;;  %v229_v25 = vsel %vm192_vm5, %v225_v55, %v221_v62  ;;  %v230_v26 = vsel %vm1316_vm0, %v226_v20, %v222_v63 }
  0x67   :  { %v283_v29 = vmul.f32 0.935507, %v229_v25  ;;  %v284_v42 = vmul.f32 0.935507, %v230_v26  ;;  %vm1324_vm14 = vcmp.ge.f32.partialorder %v931_v2, -55.0  ;;  %vm1325_vm15 = vcmp.ge.f32.partialorder %v988_v48, -55.0 }
  0x68   :  { %v285_v43 = vadd.f32 1.0, %v281_v23  ;;  %v286_v44 = vadd.f32 1.0, %v282_v24  ;;  %vm1326_vm5 = vcmp.ge.f32.partialorder %v990_v49, -55.0  ;;  %vm1327_vm12 = vcmp.ge.f32.partialorder %v992_v52, -55.0 }
  0x69   :  { %v287_v38 = vadd.f32 1.0, %v283_v29  ;;  %v288_v47 = vadd.f32 1.0, %v284_v42  ;;  %vm1328_vm13 = vcmp.ge.f32.partialorder %v1000_v0, -55.0  ;;  %vm1329_vm4 = vcmp.ge.f32.partialorder %v1057_v45, -55.0 }
  0x6a   :  { %v289_v40 = vsel %vm1317_vm1, %v285_v43, %v281_v23  ;;  %v290_v41 = vsel %vm1318_vm2, %v286_v44, %v282_v24  ;;  %vm1330_vm0 = vcmp.ge.f32.partialorder %v1059_v46, -55.0  ;;  %vm1331_vm1 = vcmp.ge.f32.partialorder %v1061_v54, -55.0 }
  0x6b   :  { %v343_v39 = vmul.f32 0.935507, %v289_v40  ;;  %v344_v51 = vmul.f32 0.935507, %v290_v41  ;;  %v291_v34 = vsel %vm1319_vm3, %v287_v38, %v283_v29  ;;  %v292_v37 = vsel %vm1320_vm7, %v288_v47, %v284_v42 }
  0x6c   :  { %v345_v27 = vmul.f32 0.935507, %v291_v34  ;;  %v346_v28 = vmul.f32 0.935507, %v292_v37  ;;  %vm1332_vm2 = vcmp.ge.f32.partialorder %v1063_v58, -55.0  ;;  %vm1333_vm3 = vcmp.ge.f32.partialorder %v1114_v32, -55.0 }
  0x6d   :  { %v347_v60 = vadd.f32 1.0, %v343_v39  ;;  %v348_v61 = vadd.f32 1.0, %v344_v51  ;;  %vm1334_vm7 = vcmp.ge.f32.partialorder %v1116_v33, -55.0 }
  0x6e   :  { %v349_v3 = vadd.f32 1.0, %v345_v27  ;;  %v350_v30 = vadd.f32 1.0, %v346_v28 }
  0x6f   :  { %v351_v13 = vsel %vm1321_vm8, %v347_v60, %v343_v39  ;;  %v352_v14 = vsel %vm1322_vm10, %v348_v61, %v344_v51 }
  0x70   :  { %v405_v6 = vmul.f32 0.935507, %v351_v13  ;;  %v406_v7 = vmul.f32 0.935507, %v352_v14  ;;  %v353_v19 = vsel %vm1323_vm11, %v349_v3, %v345_v27  ;;  %v354_v50 = vsel %vm1324_vm14, %v350_v30, %v346_v28 }
  0x71   :  { %v407_v31 = vmul.f32 0.935507, %v353_v19  ;;  %v408_v8 = vmul.f32 0.935507, %v354_v50 }
  0x72   :  { %v409_v9 = vadd.f32 1.0, %v405_v6  ;;  %v410_v10 = vadd.f32 1.0, %v406_v7 }
  0x73   :  { %v411_v11 = vadd.f32 1.0, %v407_v31  ;;  %v412_v35 = vadd.f32 1.0, %v408_v8 }
  0x74   :  { %v413_v56 = vsel %vm1325_vm15, %v409_v9, %v405_v6  ;;  %v414_v57 = vsel %vm1326_vm5, %v410_v10, %v406_v7 }
  0x75   :  { %v467_v36 = vmul.f32 0.935507, %v413_v56  ;;  %v468_v12 = vmul.f32 0.935507, %v414_v57  ;;  %v415_v1 = vsel %vm1327_vm12, %v411_v11, %v407_v31  ;;  %v416_v2 = vsel %vm1328_vm13, %v412_v35, %v408_v8 }
  0x76   :  { %v469_v15 = vmul.f32 0.935507, %v415_v1  ;;  %v470_v16 = vmul.f32 0.935507, %v416_v2 }
  0x77   :  { %v471_v17 = vadd.f32 1.0, %v467_v36  ;;  %v472_v18 = vadd.f32 1.0, %v468_v12 }
  0x78   :  { %v473_v62 = vadd.f32 1.0, %v469_v15  ;;  %v474_v63 = vadd.f32 1.0, %v470_v16 }
  0x79   :  { %v475_v48 = vsel %vm1329_vm4, %v471_v17, %v467_v36  ;;  %v476_v49 = vsel %vm1330_vm0, %v472_v18, %v468_v12 }
  0x7a   :  { %v529_v4 = vmul.f32 0.935507, %v475_v48  ;;  %v530_v5 = vmul.f32 0.935507, %v476_v49  ;;  %v477_v52 = vsel %vm1331_vm1, %v473_v62, %v469_v15  ;;  %v478_v0 = vsel %vm1332_vm2, %v474_v63, %v470_v16 }
  0x7b   :  { %v531_v55 = vmul.f32 0.935507, %v477_v52  ;;  %v532_v20 = vmul.f32 0.935507, %v478_v0 }
  0x7c   :  { %v533_v21 = vadd.f32 1.0, %v529_v4  ;;  %v534_v22 = vadd.f32 1.0, %v530_v5 }
  0x7d   :  { %v535_v23 = vadd.f32 1.0, %v531_v55  ;;  %v536_v24 = vadd.f32 1.0, %v532_v20 }
  0x7e   :  { %v537_v45 = vsel %vm1333_vm3, %v533_v21, %v529_v4  ;;  %v538_v46 = vsel %vm1334_vm7, %v534_v22, %v530_v5 }
  0x7f   :  { %545 = vst [vmem:[%s1282_s5] sm:$0xff] %v537_v45  ;;  %546 = vst [vmem:[%s1282_s5 + $0x8] sm:$0xff] %v538_v46  ;;  %v539_v54 = vsel %vm502_vm9, %v535_v23, %v531_v55  ;;  %v540_v58 = vsel %vm503_vm6, %v536_v24, %v532_v20 }
  0x80   :  { %547 = vst [vmem:[%s1282_s5 + $0x10] sm:$0xff] %v539_v54  ;;  %548 = vst [vmem:[%s1282_s5 + $0x18] sm:$0xff] %v540_v58 }

</bundles_post_ra>
